<compile_context>
chip_gen: v5e
topology: v5e:2x2
jax: 0.10.0
libtpu: 0.0.40
codegen_flags: <defaults>
</compile_context>

<pallas_src>
import jax
import jax.numpy as jnp
from jax.experimental import pallas as pl
from jax.experimental.pallas import tpu as pltpu

NEG_INF = -1e30          # log-prob of "definitely not an object" (padding)
LANE = 128               # TPU lane width: object axis & batched outputs padded to it
EXIST_LOG_CLAMP = -1e-6  # keeps log1p(-exp(m)) finite in f32 as p -> 1

MAX_UNROLL_CONCEPTS = 8  # longer filter chains use a rolled fori_loop
MXU_REDUCE_MIN_D = 256   # at large D, do the D-reduction on the MXU

# VMEM sizing: we ask Mosaic for 48 MiB scoped VMEM (v7x physical is 64 MiB,
# v5e/v6e have 128 MiB) and plan the batch tile against a 36 MiB working set
# that accounts for double-buffered inputs plus live element-wise temporaries.
VMEM_LIMIT_BYTES = 48 << 20
VMEM_HEADROOM_BYTES = 36 << 20
LIVE_BLOCK_COPIES = 6
MAX_BATCH_TILE = 1024

_COUNT, _EXIST, _SCORES = "count", "exist", "scores"


def _round_up(x, m):
    return ((x + m - 1) // m) * m


def _choose_batch_tile(d, n_pad):
    """Scenes per grid step, sized so the pipelined working set fits VMEM."""
    per_scene_bytes = (d + 1) * n_pad * 4            # f32 feature block + score row
    tb = VMEM_HEADROOM_BYTES // (LIVE_BLOCK_COPIES * per_scene_bytes)
    tb = min(MAX_BATCH_TILE, tb)
    tb = max(LANE, (tb // LANE) * LANE)              # lane-aligned for batched outputs
    # TODO(synk): for very large D a D/N grid axis would also be needed; the
    # module's feature dims (tens) never get close to that.
    return int(tb)


# ----------------------------------------------------------------------------
# Pallas kernels (one fused kernel per query shape)
# ----------------------------------------------------------------------------

def _chain_log_scores(feat, concepts, scores):
    """Apply a chain of box-membership filters fully inside the kernel.

    feat:     (TB, D, N)  object features, objects on the 128-lane axis
    concepts: (2, D, C)   [0]=centers, [1]=edges, one column per chained filter
    scores:   (TB, 1, N)  running per-object log-scores (lane dense)
    returns   (TB, 1, N)  min(scores, log_pdf_1, ..., log_pdf_C)
    """
    centers, edges = concepts[0], concepts[1]        # (D, C)
    d, num_c = centers.shape
    use_mxu = d >= MXU_REDUCE_MIN_D
    ones_row = jnp.ones((1, d), jnp.float32) if use_mxu else None

    # TODO(synk): calculate_filter_log_pdf is not given in the source; assumed
    # box-membership log-pdf: -sum_d relu(|x_d - center_d| - edge_d).
    def apply_one(cur, center, edge):                # center/edge: (D, 1)
        excess = jnp.maximum(jnp.abs(feat - center[None]) - edge[None], 0.0)
        if use_mxu:
            # Offload the D reduction to the otherwise-idle MXU at large D.
            neg = jnp.einsum("od,bdn->bon", ones_row, excess,
                             preferred_element_type=jnp.float32)   # (TB, 1, N)
        else:
            neg = jnp.sum(excess, axis=1, keepdims=True)           # (TB, 1, N)
        return jnp.minimum(cur, -neg)

    if num_c <= MAX_UNROLL_CONCEPTS:                 # short chains: unrolled
        cur = scores
        for c in range(num_c):
            cur = apply_one(cur, centers[:, c:c + 1], edges[:, c:c + 1])
        return cur

    def body(c, cur):                                # long chains: bounded liveness
        center = jax.lax.dynamic_slice_in_dim(centers, c, 1, axis=1)
        edge = jax.lax.dynamic_slice_in_dim(edges, c, 1, axis=1)
        return apply_one(cur, center, edge)

    return jax.lax.fori_loop(0, num_c, body, scores)


def _count_row(cur):
    """(TB, 1, N) log-scores -> (1, TB) expected counts, lane-dense row."""
    return jnp.sum(jnp.exp(cur[:, 0, :]), axis=-1)[None, :]


def _store_exist(cur, out_ref):
    """(TB, 1, N) log-scores -> out_ref (2, TB): [log p(exist), log p(!exist)]."""
    m = jnp.max(cur[:, 0, :], axis=-1)               # (TB,) = log exist_prob
    m = jnp.minimum(m, EXIST_LOG_CLAMP)              # keep the complement finite
    out_ref[0, :] = m
    out_ref[1, :] = jnp.log1p(-jnp.exp(m))


def _filter_scores_kernel(feat_ref, con_ref, scores_ref, out_ref):
    out_ref[...] = _chain_log_scores(feat_ref[...], con_ref[...], scores_ref[...])


def _filter_count_kernel(feat_ref, con_ref, scores_ref, out_ref):
    cur = _chain_log_scores(feat_ref[...], con_ref[...], scores_ref[...])
    out_ref[...] = _count_row(cur)


def _filter_exist_kernel(feat_ref, con_ref, scores_ref, out_ref):
    cur = _chain_log_scores(feat_ref[...], con_ref[...], scores_ref[...])
    _store_exist(cur, out_ref)


def _count_kernel(scores_ref, out_ref):
    out_ref[...] = _count_row(scores_ref[...])


def _exist_kernel(scores_ref, out_ref):
    _store_exist(scores_ref[...], out_ref)


# ----------------------------------------------------------------------------
# pallas_call launcher: one call per query, gridded over the scene batch
# ----------------------------------------------------------------------------

def _out_shape_and_spec(mode, b_pad, n_pad, tb, gridded):
    if mode == _SCORES:
        shape, block, imap = (b_pad, 1, n_pad), (tb, 1, n_pad), (lambda i: (i, 0, 0))
    elif mode == _COUNT:
        shape, block, imap = (1, b_pad), (1, tb), (lambda i: (0, i))
    else:  # _EXIST
        shape, block, imap = (2, b_pad), (2, tb), (lambda i: (0, i))
    out_shape = jax.ShapeDtypeStruct(shape, jnp.float32)
    if gridded:
        return out_shape, pl.BlockSpec(block, imap)
    return out_shape, pl.BlockSpec(memory_space=pltpu.MemorySpace.VMEM)


def _launch(kernel, mode, scores, feat=None, concepts=None, *, batch_tile):
    """Launch one fused kernel over the whole (padded) scene batch."""
    b_pad, _, n_pad = scores.shape
    tb = batch_tile
    gridded = b_pad > tb
    vmem_full = pl.BlockSpec(memory_space=pltpu.MemorySpace.VMEM)

    args, in_specs = [], []
    if feat is not None:
        d = feat.shape[1]
        args += [feat, concepts]
        if gridded:
            in_specs += [pl.BlockSpec((tb, d, n_pad), lambda i: (i, 0, 0)),
                         pl.BlockSpec(concepts.shape, lambda i: (0, 0, 0))]
        else:
            in_specs += [vmem_full, vmem_full]
    args.append(scores)
    in_specs.append(pl.BlockSpec((tb, 1, n_pad), lambda i: (i, 0, 0))
                    if gridded else vmem_full)

    out_shape, out_spec = _out_shape_and_spec(mode, b_pad, n_pad, tb, gridded)

    if gridded:
        assert b_pad % tb == 0, "make_context must pad the scene axis to batch_tile"
        params = pltpu.CompilerParams(dimension_semantics=("parallel",),
                                      vmem_limit_bytes=VMEM_LIMIT_BYTES)
        call = pl.pallas_call(kernel, grid=(b_pad // tb,), in_specs=in_specs,
                              out_specs=out_spec, out_shape=out_shape,
                              compiler_params=params)
    else:
        # Single block: no grid, no pipeline prologue — whole arrays in VMEM.
        params = pltpu.CompilerParams(vmem_limit_bytes=VMEM_LIMIT_BYTES)
        call = pl.pallas_call(kernel, in_specs=in_specs, out_specs=out_spec,
                              out_shape=out_shape, compiler_params=params)
    return call(*args)


def pallas_filter_scores(feat, concepts, scores, batch_tile):
    return _launch(_filter_scores_kernel, _SCORES, scores, feat, concepts,
                   batch_tile=batch_tile)


def pallas_filter_reduce(feat, concepts, scores, mode, batch_tile):
    kernel = _filter_count_kernel if mode == _COUNT else _filter_exist_kernel
    return _launch(kernel, mode, scores, feat, concepts, batch_tile=batch_tile)


def pallas_reduce(scores, mode, batch_tile):
    kernel = _count_kernel if mode == _COUNT else _exist_kernel
    return _launch(kernel, mode, scores, batch_tile=batch_tile)


# ----------------------------------------------------------------------------
# Python glue: program parsing + executor (mirrors the PyTorch module)
# ----------------------------------------------------------------------------

class FuncNode:
    def __init__(self, token, children=None):
        self.token = token
        self.children = children or []


def toFuncNode(s):
    s = s.replace(" ", "")

    def parse(i):
        j = i
        while j < len(s) and s[j] not in "(),":
            j += 1
        node = FuncNode(s[i:j])
        if j < len(s) and s[j] == "(":
            j += 1
            while s[j] != ")":
                child, j = parse(j)
                node.children.append(child)
                if s[j] == ",":
                    j += 1
            j += 1
        return node, j

    node, _ = parse(0)
    return node


class ConceptBox:
    def __init__(self, name, kind, center, edge):
        self.name = name
        self.kind = kind
        self.center = center          # (D,)
        self.edge = edge              # (D,)


def make_joint_concept(c1, c2):
    # Plain jnp on purpose: a (D,)-sized elementwise op cannot amortize a
    # pallas_call; XLA fuses it into neighbouring ops for free.
    # TODO(synk): M(.,.) / m(.,.) are undefined in the source; assumed
    # element-wise max of upper bounds / min of lower bounds (bounding box).
    upper = jnp.maximum(c1.center + c1.edge, c2.center + c2.edge)
    lower = jnp.minimum(c1.center - c1.edge, c2.center - c2.edge)
    joint_edge = upper - lower
    lower_bound = lower
    upper_bound = lower_bound + joint_edge
    center = (lower_bound + upper_bound) / 2.0
    edge = upper_bound - center
    return ConceptBox("{} and {}".format(c1.name, c2.name), "complex", center, edge)


def make_context(features, scores, batch_tile=None):
    """Build the kernel-facing context ONCE.

    features: (N, D) single scene  or (B, N, D) scene batch
    scores:   (N,)                 or (B, N)   per-object log-probabilities

    Internal layout (everything the kernels touch):
      features -> (B_pad, D, N_PAD)  objects on the 128-lane axis
      scores   -> (B_pad, 1, N_PAD)  lane-dense per-object log-scores

    INVARIANT (count correctness): all padding lanes / padding scenes hold
    NEG_INF in `scores`, so exp(score) == 0 and they contribute nothing to
    `count` and never win the `exist` max.  Do not re-initialise padding to 0.
    """
    features = jnp.asarray(features, jnp.float32)
    scores = jnp.asarray(scores, jnp.float32)
    single = features.ndim == 2
    if single:
        features = features[None]
        scores = scores[None]
    assert features.ndim == 3 and scores.ndim == 2
    B, N, D = features.shape
    n_pad = _round_up(max(N, 1), LANE)
    tb = _round_up(batch_tile, LANE) if batch_tile else _choose_batch_tile(D, n_pad)
    b_pad = B if B <= tb else _round_up(B, tb)

    feat = jnp.zeros((b_pad, D, n_pad), jnp.float32)
    feat = feat.at[:B, :, :N].set(jnp.transpose(features, (0, 2, 1)))
    sc = jnp.full((b_pad, 1, n_pad), NEG_INF, jnp.float32)
    sc = sc.at[:B, 0, :N].set(scores)
    return {"features": feat, "scores": sc,
            "num_scenes": B, "single": single, "batch_tile": tb}


class QuasiExecutor:
    def __init__(self, concepts):
        self.static_concepts = concepts["static_concepts"]
        self.dynamic_concepts = concepts["dynamic_concepts"]
        self.relations = concepts["relations"]
        self._jit_cache = {}

    def get_concept_by_name(self, name):
        for k in self.static_concepts:
            if k.name == name:
                return k
        assert False

    def _pack_concepts(self, names):
        # One packed (2, D, C) operand ([0]=centers, [1]=edges) -> a single DMA
        # instead of two sub-tile micro-DMAs per kernel launch.
        centers = jnp.stack([jnp.asarray(self.get_concept_by_name(n).center,
                                         jnp.float32) for n in names], axis=1)
        edges = jnp.stack([jnp.asarray(self.get_concept_by_name(n).edge,
                                       jnp.float32) for n in names], axis=1)
        return jnp.stack([centers, edges], axis=0)          # (2, D, C)

    @staticmethod
    def _collect_filter_chain(node):
        names = []
        while node.token == "filter":
            names.append(node.children[1].token)
            node = node.children[0]
        names.reverse()
        return node, names

    def sample_concept(self, concept="AND(red,circle)"):
        if isinstance(concept, str):
            concept = toFuncNode(concept)

        def parse_concept(node):
            if node.token == "AND":
                return make_joint_concept(parse_concept(node.children[0]),
                                          parse_concept(node.children[1]))
            return self.get_concept_by_name(node.token)

        return parse_concept(concept)

    # ---- traced program body (arrays only; strings handled in forward) ------
    def _execute(self, node, features, scores, batch_tile):
        tok = node.token
        if tok == "scene":
            return {"features": features, "scores": scores}
        if tok == "filter":
            base_node, names = self._collect_filter_chain(node)
            base = self._execute(base_node, features, scores, batch_tile)
            concepts = self._pack_concepts(names)
            new_scores = pallas_filter_scores(base["features"], concepts,
                                              base["scores"], batch_tile)
            return {"features": base["features"], "scores": new_scores}
        if tok in ("count", "exist"):
            mode = _COUNT if tok == "count" else _EXIST
            child = node.children[0]
            if child.token == "filter":             # fused filter-chain + reduce
                base_node, names = self._collect_filter_chain(child)
                base = self._execute(base_node, features, scores, batch_tile)
                concepts = self._pack_concepts(names)
                return pallas_filter_reduce(base["features"], concepts,
                                            base["scores"], mode, batch_tile)
            input_set = self._execute(child, features, scores, batch_tile)
            return pallas_reduce(input_set["scores"], mode, batch_tile)
        if tok in ("relate", "unique", "query"):
            return {"features": features, "scores": scores}
        return 0

    def forward(self, program, context):
        node = toFuncNode(program) if isinstance(program, str) else program
        batch_tile = context["batch_tile"]

        def run(features, scores):
            return self._execute(node, features, scores, batch_tile)

        if isinstance(program, str):
            key = (program, batch_tile)
            fn = self._jit_cache.get(key)
            if fn is None:
                fn = jax.jit(run)          # whole program -> one XLA executable
                self._jit_cache[key] = fn
        else:
            fn = run

        raw = fn(context["features"], context["scores"])

        num_scenes, single = context["num_scenes"], context["single"]
        tok = node.token
        if tok == "count":                           # raw: (1, B_pad) lane-dense
            counts = raw[0, :num_scenes]
            return counts[0] if single else counts
        if tok == "exist":                           # raw: (2, B_pad) lane-dense
            dist = raw[:, :num_scenes]
            return {"outputs": ["True", "False"],
                    "scores": dist[:, 0] if single else dist.T}
        return raw                                   # dict with internal layout


# ----------------------------------------------------------------------------
# main
# ----------------------------------------------------------------------------

if __name__ == "__main__":
    key = jax.random.PRNGKey(0)
    N, D = 8, 32  # 8 objects, 32-dim box-embedding feature space

    kf, ks, kc, kbf, kbs = jax.random.split(key, 5)
    features = jax.random.normal(kf, (N, D), jnp.float32)
    # per-object log-probabilities (log of a prob in (0, 1))
    scores = jax.nn.log_sigmoid(jax.random.normal(ks, (N,), jnp.float32))

    names = ["red", "blue", "circle", "square"]
    ckeys = jax.random.split(kc, 2 * len(names))
    static_concepts = []
    for i, name in enumerate(names):
        center = 0.1 * jax.random.normal(ckeys[2 * i], (D,), jnp.float32)
        edge = jnp.abs(jax.random.normal(ckeys[2 * i + 1], (D,), jnp.float32)) + 0.5
        static_concepts.append(ConceptBox(name, "static", center, edge))

    executor = QuasiExecutor({"static_concepts": static_concepts,
                              "dynamic_concepts": [],
                              "relations": []})

    # ---- single-scene path (no grid, full-array VMEM blocks) ----------------
    context = make_context(features, scores)
    count_result = executor.forward("count(filter(scene,red))", context)
    exist_result = executor.forward("exist(filter(scene,circle))", context)
    chain_result = executor.forward("filter(filter(scene,red),circle)", context)
    scene_count = executor.forward("count(scene)", context)
    scene_exist = executor.forward("exist(scene)", context)
    scene_result = executor.forward("scene()", context)
    joint = executor.sample_concept("AND(red,circle)")

    # ---- batched path (grid over scene blocks, parallel across TensorCores) -
    B = 192                             # > batch_tile -> multi-step grid
    bfeat = jax.random.normal(kbf, (B, N, D), jnp.float32)
    bscores = jax.nn.log_sigmoid(jax.random.normal(kbs, (B, N), jnp.float32))
    bctx = make_context(bfeat, bscores, batch_tile=128)   # b_pad=256 -> grid=(2,)
    bcount = executor.forward("count(filter(scene,red))", bctx)            # (B,)
    bexist = executor.forward("exist(filter(scene,circle))", bctx)         # (B, 2)
    bscene_count = executor.forward("count(scene)", bctx)                  # (B,)
    bfilter = executor.forward("filter(filter(scene,red),circle)", bctx)

    # ---- plain-jnp reference (same assumed log-pdf) --------------------------
    def ref_chain(feats_nd, sc_n, concept_names):
        cur = sc_n
        for nm in concept_names:
            cpt = executor.get_concept_by_name(nm)
            excess = jnp.maximum(
                jnp.abs(feats_nd - cpt.center[None, :]) - cpt.edge[None, :], 0.0)
            cur = jnp.minimum(cur, -jnp.sum(excess, axis=-1))
        return cur

    ref_count = jnp.sum(jnp.exp(ref_chain(features, scores, ["red"])))
    ref_exist_log = jnp.max(ref_chain(features, scores, ["circle"]))
    ref_chain_scores = ref_chain(features, scores, ["red", "circle"])
    ref_scene_count = jnp.sum(jnp.exp(scores))
    ref_scene_exist = jnp.max(scores)
    ref_bcount = jax.vmap(
        lambda f, s: jnp.sum(jnp.exp(ref_chain(f, s, ["red"]))))(bfeat, bscores)
    ref_bexist = jax.vmap(
        lambda f, s: jnp.max(ref_chain(f, s, ["circle"])))(bfeat, bscores)
    ref_bfilter = jax.vmap(
        lambda f, s: ref_chain(f, s, ["red", "circle"]))(bfeat, bscores)
    ref_bscene_count = jnp.sum(jnp.exp(bscores), axis=-1)

    jax.block_until_ready((count_result, exist_result["scores"],
                           chain_result["scores"], scene_count,
                           scene_exist["scores"], scene_result["scores"],
                           joint.center, joint.edge,
                           bcount, bexist["scores"], bscene_count,
                           bfilter["scores"]))

    assert jnp.allclose(count_result, ref_count, rtol=1e-3, atol=1e-3)
    assert jnp.allclose(exist_result["scores"][0], ref_exist_log, rtol=1e-3, atol=1e-3)
    assert jnp.allclose(chain_result["scores"][0, 0, :N], ref_chain_scores,
                        rtol=1e-3, atol=1e-3)
    assert jnp.allclose(scene_count, ref_scene_count, rtol=1e-3, atol=1e-3)
    assert jnp.allclose(scene_exist["scores"][0], ref_scene_exist, rtol=1e-3, atol=1e-3)
    assert jnp.allclose(bcount, ref_bcount, rtol=1e-3, atol=1e-3)
    assert jnp.allclose(bexist["scores"][:, 0], ref_bexist, rtol=1e-3, atol=1e-3)
    assert jnp.allclose(bscene_count, ref_bscene_count, rtol=1e-3, atol=1e-3)
    assert jnp.allclose(bfilter["scores"][:B, 0, :N], ref_bfilter, rtol=1e-3, atol=1e-3)

    print("KERNEL_OK")
</pallas_src>

<mosaic_0001>
module attributes {stable_mosaic.version = 11 : i64} {
  func.func @_filter_count_kernel(%arg0: memref<1x32x128xf32, #tpu.memory_space<vmem>>, %arg1: memref<2x32x1xf32, #tpu.memory_space<vmem>>, %arg2: memref<1x1x128xf32, #tpu.memory_space<vmem>>, %arg3: memref<1x1xf32, #tpu.memory_space<vmem>>) attributes {dimension_semantics = [], scalar_prefetch = 0 : i64, scratch_operands = 0 : i64, tpu.core_type = #tpu.core_type<tc>} {
    %c0 = arith.constant 0 : index
    %c0_0 = arith.constant 0 : index
    %c0_1 = arith.constant 0 : index
    %0 = vector.load %arg0[%c0, %c0_0, %c0_1] : memref<1x32x128xf32, #tpu.memory_space<vmem>>, vector<1x32x128xf32>
    %c0_2 = arith.constant 0 : index
    %c0_3 = arith.constant 0 : index
    %c0_4 = arith.constant 0 : index
    %1 = vector.load %arg1[%c0_2, %c0_3, %c0_4] : memref<2x32x1xf32, #tpu.memory_space<vmem>>, vector<2x32x1xf32>
    %c0_5 = arith.constant 0 : index
    %c0_6 = arith.constant 0 : index
    %c0_7 = arith.constant 0 : index
    %2 = vector.load %arg2[%c0_5, %c0_6, %c0_7] : memref<1x1x128xf32, #tpu.memory_space<vmem>>, vector<1x1x128xf32>
    %3 = vector.extract_strided_slice %1 {offsets = [0, 0, 0], sizes = [1, 32, 1], strides = [1, 1, 1]} : vector<2x32x1xf32> to vector<1x32x1xf32>
    %4 = vector.shape_cast %3 : vector<1x32x1xf32> to vector<32x1xf32>
    %5 = vector.extract_strided_slice %1 {offsets = [1, 0, 0], sizes = [1, 32, 1], strides = [1, 1, 1]} : vector<2x32x1xf32> to vector<1x32x1xf32>
    %6 = vector.shape_cast %5 : vector<1x32x1xf32> to vector<32x1xf32>
    %7 = vector.shape_cast %4 : vector<32x1xf32> to vector<1x32x1xf32>
    %8 = vector.broadcast %7 : vector<1x32x1xf32> to vector<1x32x128xf32>
    %9 = arith.subf %0, %8 : vector<1x32x128xf32>
    %10 = math.absf %9 : vector<1x32x128xf32>
    %11 = vector.shape_cast %6 : vector<32x1xf32> to vector<1x32x1xf32>
    %12 = vector.broadcast %11 : vector<1x32x1xf32> to vector<1x32x128xf32>
    %13 = arith.subf %10, %12 : vector<1x32x128xf32>
    %cst = arith.constant 0.000000e+00 : f32
    %14 = vector.broadcast %cst : f32 to vector<1x32x128xf32>
    %15 = arith.maximumf %13, %14 : vector<1x32x128xf32>
    %cst_8 = arith.constant dense<0.000000e+00> : vector<1x128xf32>
    %16 = vector.multi_reduction <add>, %15, %cst_8 [1] : vector<1x32x128xf32> to vector<1x128xf32>
    %17 = vector.shape_cast %16 : vector<1x128xf32> to vector<1x1x128xf32>
    %cst_9 = arith.constant 0.000000e+00 : f32
    %18 = vector.broadcast %cst_9 : f32 to vector<1x1x128xf32>
    %19 = arith.subf %18, %17 : vector<1x1x128xf32>
    %20 = arith.minimumf %2, %19 : vector<1x1x128xf32>
    %21 = vector.shape_cast %20 : vector<1x1x128xf32> to vector<1x128xf32>
    %22 = math.exp %21 : vector<1x128xf32>
    %cst_10 = arith.constant dense<0.000000e+00> : vector<1xf32>
    %23 = vector.multi_reduction <add>, %22, %cst_10 [1] : vector<1x128xf32> to vector<1xf32>
    %24 = vector.shape_cast %23 : vector<1xf32> to vector<1x1xf32>
    %c0_11 = arith.constant 0 : index
    %c0_12 = arith.constant 0 : index
    %25 = vector.load %arg3[%c0_11, %c0_12] : memref<1x1xf32, #tpu.memory_space<vmem>>, vector<1x1xf32>
    tpu.vector_store %arg3[%c0_11, %c0_12], %24 {strides = array<i32>} : memref<1x1xf32, #tpu.memory_space<vmem>>, vector<1x1xf32>,
    return
  }
}

</mosaic_0001>

<bundles_post_ra>
// kernel: run.1
= control target key start
LH: loop header
LB: loop body
LE: loop exit
PB: predicated region body
PF: predicated region fallthrough
CT: control target
= control target key end

     0   :  { %8 = vsyncpa [#allocation3], 0  ;;  %s319_s0 = inlined_call_operand.hbm [shape: f32[1,32,128], index: 0, kind: input, shape index: {}]   ;;  %s320_s1 = inlined_call_operand.hbm [shape: f32[2,32,1], index: 1, kind: input, shape index: {}]   ;;  %s321_s2 = inlined_call_operand.hbm [shape: f32[1,1,128], index: 2, kind: input, shape index: {}]   ;;  %s322_s3 = inlined_call_operand.hbm [shape: f32[1,1], index: 3, kind: output, shape index: {}]  }
   0x1   :  { %9 = vsyncpa [#allocation6], 0 }
   0x2   :  { %10 = vsyncpa [#allocation4], 0  ;;  %s28_s14 = sshll.u32 %s320_s1, 4  ;;  %s280_s15 = smov [#allocation5]   ;;  %s29_s14 = int_to_ptr.hbm [resolvable:$true] %s28_s14 }
   0x3   :  { %s30_s16 = sshll.u32 %s280_s15, 4  ;;  %s15_s19 = sshll.u32 %s319_s0, 4  ;;  %s31_s16 = int_to_ptr.vmem [resolvable:$true] %s30_s16  ;;  %s16_s19 = int_to_ptr.hbm [resolvable:$true] %s15_s19 }
   0x4   :  { %s281_s20 = smov 128   ;;  %s282_s21 = smov 8  }
   0x5   :  { %36 = dma.hbm_to_vmem [thread:$0]  %s29_s14, 1024, %s31_s16, [#allocation6], %s281_s20, %s281_s20, %s282_s21  }
   0x6   :  { %s283_s22 = smov [#allocation2]   ;;  %s42_s26 = sshll.u32 %s321_s2, 4  ;;  %s43_s26 = int_to_ptr.hbm [resolvable:$true] %s42_s26 }
   0x7   :  { %s17_s23 = sshll.u32 %s283_s22, 4  ;;  %s284_s1 = smov [#allocation7]   ;;  %s18_s23 = int_to_ptr.vmem [resolvable:$true] %s17_s23 }
   0x8   :  { %23 = dma.hbm_to_vmem [thread:$0]  %s16_s19, 512, %s18_s23, [#allocation3], %s281_s20, %s281_s20, %s282_s21  }
   0x9   :  { %s44_s27 = sshll.u32 %s284_s1, 4  ;;  %s45_s27 = int_to_ptr.vmem [resolvable:$true] %s44_s27 }
   0xa   :  { %47 = dma.hbm_to_vmem [thread:$0]  %s43_s26, 16, %s45_s27, [#allocation6]  }
   0xb   :  { %274 = dma.done.wait [#allocation3], 512  }
   0xc   :  { %275 = vsyncadd [#allocation3], 4294966784 }
   0xd   :  { %276 = dma.done.wait [#allocation6], 1040  }
   0xe   :  { %277 = vsyncadd [#allocation6], 4294966256  ;;  %v285_v0 = vmov 0   ;;  %v66_v1 = vld [vmem:[#allocation5 + $0x10] sm:$0xff]  ;;  %v64_v2 = vld [vmem:[#allocation5] sm:$0xff]  ;;  %vm142_vm0 = vcmask 1040384  }
   0xf   :  { %174 = vset.pattern.permute.xlu1 %v285_v0  ;;  %173 = vset.pattern.permute.xlu0 %v285_v0  ;;  %v68_v3 = vld [vmem:[#allocation5 + $0x20] sm:$0xff]  ;;  %v67_v4 = vld [vmem:[#allocation5 + $0x18] sm:$0xff]  ;;  %v65_v5 = vld [vmem:[#allocation5 + $0x8] sm:$0xff]  ;;  %s286_s0 = smov [#allocation8]   ;;  %s155_s30 = sshll.u32 %s322_s3, 4  ;;  %vm146_vm1 = vcmask 0   ;;  %s156_s30 = int_to_ptr.hbm [resolvable:$true] %s155_s30 }
  0x10   :  { %175 = vset.pattern.permute.xlu2 %v285_v0  ;;  %85 = vperm.xlu1 %174, %v66_v1   ;;  %v69_v6 = vld [vmem:[#allocation5 + $0x28] sm:$0xff]  ;;  %v71_v7 = vld [vmem:[#allocation5 + $0x38] sm:$0xff]  ;;  %v70_v8 = vld [vmem:[#allocation5 + $0x30] sm:$0xff]  ;;  %s153_s2 = sshll.u32 %s286_s0, 4  ;;  %s154_s2 = int_to_ptr.vmem [resolvable:$true] %s153_s2 }
  0x11   :  { %75 = vperm.xlu0 %173, %v64_v2   ;;  %103 = vperm.xlu2 %175, %v68_v3   ;;  %v60_v12 = vld [vmem:[#allocation2] sm:$0xff]  ;;  %v61_v14 = vld [vmem:[#allocation2 + $0x8] sm:$0xff]  ;;  %v62_v15 = vld [vmem:[#allocation2 + $0x10] sm:$0xff] }
  0x12   :  { %v63_v17 = vld [vmem:[#allocation2 + $0x18] sm:$0xff]  ;;  %v72_v46 = vld [vmem:[#allocation7] sm:$0x1] }
  0x18   :  { %90 = vperm.xlu1 %174, %v67_v4  }
  0x19   :  { %80 = vperm.xlu0 %173, %v65_v5   ;;  %108 = vperm.xlu2 %175, %v69_v6  }
  0x20   :  { %118 = vperm.xlu1 %174, %v71_v7  }
  0x21   :  { %113 = vperm.xlu0 %173, %v70_v8  }
  0x6b   :  { %v104_v11 = vpop.permute.xlu2 %103 }
  0x73   :  { %v109_v24 = vpop.permute.xlu2 %108 }
  0x82   :  { %v86_v9 = vpop.permute.xlu1 %85 }
  0x83   :  { %v76_v10 = vpop.permute.xlu0 %75  ;;  %v95_v21 = vsub.f32 %v62_v15, %v86_v9 }
  0x84   :  { %v93_v13 = vsub.f32 %v60_v12, %v76_v10 }
  0x85   :  { %v99_v27 = vand.u32 2147483647, %v95_v21 }
  0x86   :  { %v97_v19 = vand.u32 2147483647, %v93_v13 }
  0x88   :  { %v121_v25 = vsub.f32 %v97_v19, %v104_v11 }
  0x8a   :  { %v91_v16 = vpop.permute.xlu1 %90  ;;  %v125_v32 = vmax.f32 %v121_v25, 0.0 }
  0x8b   :  { %v81_v18 = vpop.permute.xlu0 %80  ;;  %v96_v22 = vsub.f32 %v63_v17, %v91_v16 }
  0x8c   :  { %v94_v20 = vsub.f32 %v61_v14, %v81_v18 }
  0x8d   :  { %v100_v28 = vand.u32 2147483647, %v96_v22 }
  0x8e   :  { %v98_v23 = vand.u32 2147483647, %v94_v20 }
  0x90   :  { %v122_v26 = vsub.f32 %v98_v23, %v109_v24 }
  0x92   :  { %v126_v29 = vmax.f32 %v122_v26, 0.0  ;;  %v119_v30 = vpop.permute.xlu1 %118 }
  0x93   :  { %v114_v31 = vpop.permute.xlu0 %113  ;;  %v124_v33 = vsub.f32 %v100_v28, %v119_v30 }
  0x94   :  { %v123_v34 = vsub.f32 %v99_v27, %v114_v31  ;;  %v129_v36 = vadd.f32 %v126_v29, %v125_v32 }
  0x95   :  { %v128_v37 = vmax.f32 %v124_v33, 0.0 }
  0x96   :  { %v127_v35 = vmax.f32 %v123_v34, 0.0 }
  0x98   :  { %v130_v38 = vadd.f32 %v129_v36, %v127_v35 }
  0x9a   :  { %v131_v39 = vadd.f32 %v130_v38, %v128_v37 }
  0x9c   :  { %v132_v40 = vrot.slane %v131_v39, 4 }
  0x9e   :  { %v133_v41 = vadd.f32 %v132_v40, %v131_v39 }
  0xa0   :  { %v134_v42 = vrot.slane %v133_v41, 2 }
  0xa2   :  { %v135_v43 = vadd.f32 %v134_v42, %v133_v41 }
  0xa4   :  { %v136_v44 = vrot.slane %v135_v43, 1 }
  0xa6   :  { %v137_v45 = vadd.f32 %v136_v44, %v135_v43 }
  0xa8   :  { %v138_v47 = vsub.f32 0.0, %v137_v45 }
  0xaa   :  { %v139_v48 = vmin.f32 %v72_v46, %v138_v47 }
  0xac   :  { %v140_v49 = vmul.f32 1.442695, %v139_v48 }
  0xae   :  { %176 = vpow2.f32 %v140_v49 }
  0xb4   :  { %v177_v50 = vpop.eup %176 }
  0xb5   :  { %v143_v51 = vsel %vm142_vm0, %v177_v50, 0.0 }
  0xb6   :  { %144 = vadd.xlane.f32.xlu2 %v143_v51 }
 0x129   :  { %v145_v52 = vpop.xlane.xlu2 %144 }
 0x12a   :  { %147 = vst.msk [vmem:[#allocation8] sm:$0x1] %vm146_vm1, %v145_v52 }
 0x12b   :  { %158 = dma.vmem_to_hbm [thread:$0]  %s154_s2, 16, %s156_s30, [#allocation4]  }
 0x12c   :  { %278 = dma.done.wait [#allocation4], 16  }
 0x12d   :  { %279 = vsyncadd [#allocation4], 4294967280 }
 0x12e   :  { %163 = vsyncpa [#allocation3], 1 }
 0x12f   :  { %164 = vsyncpa [#allocation6], 1 }
 0x130   :  { %165 = vsyncpa [#allocation4], 1 }

</bundles_post_ra>
